<compile_context>
chip_gen: v7x
topology: tpu7x:2x2x1
jax: 0.10.0
libtpu: 0.0.40
codegen_flags: <defaults>
</compile_context>

<pallas_src>
import jax
import jax.numpy as jnp
from jax.experimental import pallas as pl
from jax.experimental.pallas import tpu as pltpu

INPUT_SIZE = 13    # wine.data.shape[1]
HIDDEN_SIZE = 32
OUTPUT_SIZE = 3    # len(wine.target_names)


def wine_mlp_kernel(x_ref, w1_ref, b1_ref, w2_ref, b2_ref, out_ref):
    # x_ref: (TB, 13) f32 | w1_ref: (32, 13) f32 | b1_ref: (32, 1) f32
    # w2_ref: (3, 32) f32 | b2_ref: (3, 1) f32   | out_ref: (TB, 3) f32
    # Lane-dense compute: batch on the 128-lane axis keeps intermediates small.
    x_t = x_ref[...].T                                                   # (13, TB)
    h = jnp.dot(w1_ref[...], x_t, preferred_element_type=jnp.float32)    # (32, TB)
    h = jnp.maximum(h + b1_ref[...], 0.0)                                # bias + ReLU
    logits = jnp.dot(w2_ref[...], h, preferred_element_type=jnp.float32)  # (3, TB)
    logits = logits + b2_ref[...]
    # numerically stable softmax over the class (sublane) axis; exact divide so
    # rows sum to 1 to f32 precision.
    m = jnp.max(logits, axis=0, keepdims=True)                           # (1, TB)
    e = jnp.exp(logits - m)
    s = jnp.sum(e, axis=0, keepdims=True)                                # (1, TB)
    p = e / s                                                            # (3, TB)
    out_ref[...] = p.T.astype(out_ref.dtype)                             # (TB, 3)


def wine_classifier_forward(x, w1, b1, w2, b2, *, max_tb=8192):
    """x: (B, 13) f32; w1: (32, 13); b1: (32,); w2: (3, 32); b2: (3,) -> (B, 3)."""
    B = x.shape[0]

    # batch tile: multiple of 128 lanes (round caller-supplied cap down, >=128)
    tb_cap = max(128, (max_tb // 128) * 128)
    b_lane = 128 * pl.cdiv(B, 128)            # batch rounded up to lane width
    tb = min(tb_cap, b_lane)
    if b_lane > 128 and tb == b_lane:
        # keep >= 2 grid steps so both v7x TensorCores get work
        tb = 128 * pl.cdiv(b_lane // 128, 2)
    b_pad = tb * pl.cdiv(B, tb)
    grid = (b_pad // tb,)

    x = x.astype(jnp.float32)
    if b_pad != B:
        # pad batch rows only when B is not tile-aligned (no transpose pass)
        x_in = jnp.zeros((b_pad, INPUT_SIZE), jnp.float32).at[:B, :].set(x)
    else:
        x_in = x

    w1_c = w1.astype(jnp.float32)                           # (32, 13)
    w2_c = w2.astype(jnp.float32)                           # (3, 32)
    b1_c = b1.reshape(HIDDEN_SIZE, 1).astype(jnp.float32)   # (32, 1)
    b2_c = b2.reshape(OUTPUT_SIZE, 1).astype(jnp.float32)   # (3, 1)

    out = pl.pallas_call(
        wine_mlp_kernel,
        out_shape=jax.ShapeDtypeStruct((b_pad, OUTPUT_SIZE), jnp.float32),
        grid=grid,
        in_specs=[
            pl.BlockSpec((tb, INPUT_SIZE), lambda i: (i, 0)),            # x tile, pipelined
            pl.BlockSpec((HIDDEN_SIZE, INPUT_SIZE), lambda i: (0, 0)),   # w1 resident
            pl.BlockSpec((HIDDEN_SIZE, 1), lambda i: (0, 0)),            # b1 resident
            pl.BlockSpec((OUTPUT_SIZE, HIDDEN_SIZE), lambda i: (0, 0)),  # w2 resident
            pl.BlockSpec((OUTPUT_SIZE, 1), lambda i: (0, 0)),            # b2 resident
        ],
        out_specs=pl.BlockSpec((tb, OUTPUT_SIZE), lambda i: (i, 0)),
        compiler_params=pltpu.CompilerParams(
            dimension_semantics=("parallel",),      # megacore split on v7x
            vmem_limit_bytes=32 * 1024 * 1024,      # safe on v5e / v6e / v7x
        ),
    )(x_in, w1_c, b1_c, w2_c, b2_c)

    return out[:B, :]                                                    # (B, 3)


def init_params(key):
    """nn.Linear-style init, PyTorch (out, in) weight layout."""
    k1, k2, k3, k4 = jax.random.split(key, 4)
    bound1 = 1.0 / jnp.sqrt(float(INPUT_SIZE))
    bound2 = 1.0 / jnp.sqrt(float(HIDDEN_SIZE))
    w1 = jax.random.uniform(k1, (HIDDEN_SIZE, INPUT_SIZE), jnp.float32, -bound1, bound1)
    b1 = jax.random.uniform(k2, (HIDDEN_SIZE,), jnp.float32, -bound1, bound1)
    w2 = jax.random.uniform(k3, (OUTPUT_SIZE, HIDDEN_SIZE), jnp.float32, -bound2, bound2)
    b2 = jax.random.uniform(k4, (OUTPUT_SIZE,), jnp.float32, -bound2, bound2)
    return w1, b1, w2, b2


def reference_forward(x, w1, b1, w2, b2):
    """Plain-JAX f32 reference of the PyTorch forward."""
    hp = jax.lax.Precision.HIGHEST
    h = jnp.maximum(jnp.dot(x, w1.T, precision=hp) + b1[None, :], 0.0)
    logits = jnp.dot(h, w2.T, precision=hp) + b2[None, :]
    return jax.nn.softmax(logits, axis=-1)


if __name__ == "__main__":
    key = jax.random.PRNGKey(0)
    key_x, key_p = jax.random.split(key)
    w1, b1, w2, b2 = init_params(key_p)

    # 1) small batch -> single tile, rows padded 8 -> 128 inside the wrapper
    batch = 8
    x = jax.random.normal(key_x, (batch, INPUT_SIZE), jnp.float32)
    out = jax.block_until_ready(wine_classifier_forward(x, w1, b1, w2, b2))
    ref = reference_forward(x, w1, b1, w2, b2)
    assert out.shape == (batch, OUTPUT_SIZE)
    assert jnp.allclose(out, ref, atol=5e-3, rtol=5e-3), float(jnp.max(jnp.abs(out - ref)))
    assert jnp.allclose(jnp.sum(out, axis=-1), 1.0, atol=1e-3)

    # 2) non-aligned batch with a small tile cap -> multi-step grid + padding
    batch2 = 300
    x2 = jax.random.normal(jax.random.PRNGKey(1), (batch2, INPUT_SIZE), jnp.float32)
    out2 = jax.block_until_ready(
        wine_classifier_forward(x2, w1, b1, w2, b2, max_tb=256))
    ref2 = reference_forward(x2, w1, b1, w2, b2)
    assert out2.shape == (batch2, OUTPUT_SIZE)
    assert jnp.allclose(out2, ref2, atol=5e-3, rtol=5e-3), float(jnp.max(jnp.abs(out2 - ref2)))
    assert jnp.allclose(jnp.sum(out2, axis=-1), 1.0, atol=1e-3)

    # 3) tile-aligned batch -> no padding pass, 2 grid steps (v7x megacore path)
    batch3 = 512
    x3 = jax.random.normal(jax.random.PRNGKey(2), (batch3, INPUT_SIZE), jnp.float32)
    out3 = jax.block_until_ready(wine_classifier_forward(x3, w1, b1, w2, b2))
    ref3 = reference_forward(x3, w1, b1, w2, b2)
    assert out3.shape == (batch3, OUTPUT_SIZE)
    assert jnp.allclose(out3, ref3, atol=5e-3, rtol=5e-3), float(jnp.max(jnp.abs(out3 - ref3)))
    assert jnp.allclose(jnp.sum(out3, axis=-1), 1.0, atol=1e-3)

    print("KERNEL_OK")
</pallas_src>

<mosaic_0001>
module attributes {stable_mosaic.version = 11 : i64} {
  func.func @wine_mlp_kernel(%arg0: i32, %arg1: memref<128x13xf32, #tpu.memory_space<vmem>>, %arg2: memref<32x13xf32, #tpu.memory_space<vmem>>, %arg3: memref<32x1xf32, #tpu.memory_space<vmem>>, %arg4: memref<3x32xf32, #tpu.memory_space<vmem>>, %arg5: memref<3x1xf32, #tpu.memory_space<vmem>>, %arg6: memref<128x3xf32, #tpu.memory_space<vmem>>) attributes {dimension_semantics = [#tpu.dimension_semantics<parallel>], iteration_bounds = array<i64: 1>, scalar_prefetch = 0 : i64, scratch_operands = 0 : i64, tpu.core_type = #tpu.core_type<tc>, window_params = [{transform_indices = @transform_0, window_bounds = array<i64: 128, 13>}, {pipeline_mode = #tpu.pipeline_mode<synchronous>, transform_indices = @transform_1, window_bounds = array<i64: 32, 13>}, {pipeline_mode = #tpu.pipeline_mode<synchronous>, transform_indices = @transform_2, window_bounds = array<i64: 32, 1>}, {pipeline_mode = #tpu.pipeline_mode<synchronous>, transform_indices = @transform_3, window_bounds = array<i64: 3, 32>}, {pipeline_mode = #tpu.pipeline_mode<synchronous>, transform_indices = @transform_4, window_bounds = array<i64: 3, 1>}, {transform_indices = @transform_5, window_bounds = array<i64: 128, 3>}]} {
    %c0 = arith.constant 0 : index
    %c0_0 = arith.constant 0 : index
    %0 = vector.load %arg1[%c0, %c0_0] : memref<128x13xf32, #tpu.memory_space<vmem>>, vector<128x13xf32>
    %1 = tpu.transpose %0, [1, 0] : vector<128x13xf32> -> vector<13x128xf32>
    %c0_1 = arith.constant 0 : index
    %c0_2 = arith.constant 0 : index
    %2 = vector.load %arg2[%c0_1, %c0_2] : memref<32x13xf32, #tpu.memory_space<vmem>>, vector<32x13xf32>
    %cst = arith.constant dense<0.000000e+00> : vector<32x128xf32>
    %3 = tpu.matmul %2, %1, %cst {dimension_numbers = #tpu.dot_dimension_numbers<[1], [0], [0], [1], [0, 0, 1, 1], [], []>} : vector<32x13xf32>, vector<13x128xf32>, vector<32x128xf32> -> vector<32x128xf32>
    %c0_3 = arith.constant 0 : index
    %c0_4 = arith.constant 0 : index
    %4 = vector.load %arg3[%c0_3, %c0_4] : memref<32x1xf32, #tpu.memory_space<vmem>>, vector<32x1xf32>
    %5 = vector.broadcast %4 : vector<32x1xf32> to vector<32x128xf32>
    %6 = arith.addf %3, %5 : vector<32x128xf32>
    %cst_5 = arith.constant 0.000000e+00 : f32
    %7 = vector.broadcast %cst_5 : f32 to vector<32x128xf32>
    %8 = arith.maximumf %6, %7 : vector<32x128xf32>
    %c0_6 = arith.constant 0 : index
    %c0_7 = arith.constant 0 : index
    %9 = vector.load %arg4[%c0_6, %c0_7] : memref<3x32xf32, #tpu.memory_space<vmem>>, vector<3x32xf32>
    %cst_8 = arith.constant dense<0.000000e+00> : vector<3x128xf32>
    %10 = tpu.matmul %9, %8, %cst_8 {dimension_numbers = #tpu.dot_dimension_numbers<[1], [0], [0], [1], [0, 0, 1, 1], [], []>} : vector<3x32xf32>, vector<32x128xf32>, vector<3x128xf32> -> vector<3x128xf32>
    %c0_9 = arith.constant 0 : index
    %c0_10 = arith.constant 0 : index
    %11 = vector.load %arg5[%c0_9, %c0_10] : memref<3x1xf32, #tpu.memory_space<vmem>>, vector<3x1xf32>
    %12 = vector.broadcast %11 : vector<3x1xf32> to vector<3x128xf32>
    %13 = arith.addf %10, %12 : vector<3x128xf32>
    %cst_11 = arith.constant dense<0xFF800000> : vector<128xf32>
    %14 = vector.multi_reduction <maximumf>, %13, %cst_11 [0] : vector<3x128xf32> to vector<128xf32>
    %15 = vector.shape_cast %14 : vector<128xf32> to vector<1x128xf32>
    %16 = vector.broadcast %15 : vector<1x128xf32> to vector<3x128xf32>
    %17 = arith.subf %13, %16 : vector<3x128xf32>
    %18 = math.exp %17 : vector<3x128xf32>
    %cst_12 = arith.constant dense<0.000000e+00> : vector<128xf32>
    %19 = vector.multi_reduction <add>, %18, %cst_12 [0] : vector<3x128xf32> to vector<128xf32>
    %20 = vector.shape_cast %19 : vector<128xf32> to vector<1x128xf32>
    %21 = vector.broadcast %20 : vector<1x128xf32> to vector<3x128xf32>
    %22 = arith.divf %18, %21 : vector<3x128xf32>
    %23 = tpu.transpose %22, [1, 0] : vector<3x128xf32> -> vector<128x3xf32>
    %c0_13 = arith.constant 0 : index
    %c0_14 = arith.constant 0 : index
    %24 = vector.load %arg6[%c0_13, %c0_14] : memref<128x3xf32, #tpu.memory_space<vmem>>, vector<128x3xf32>
    tpu.vector_store %arg6[%c0_13, %c0_14], %23 {strides = array<i32>} : memref<128x3xf32, #tpu.memory_space<vmem>>, vector<128x3xf32>,
    return
  }
  func.func @transform_0(%arg0: i32) -> (i32, i32) {
    %c0_i32 = arith.constant 0 : i32
    %c0_i32_0 = arith.constant 0 : i32
    return %arg0, %c0_i32 : i32, i32
  }
  func.func @transform_1(%arg0: i32) -> (i32, i32) {
    %c0_i32 = arith.constant 0 : i32
    %c0_i32_0 = arith.constant 0 : i32
    %c0_i32_1 = arith.constant 0 : i32
    return %c0_i32, %c0_i32_0 : i32, i32
  }
  func.func @transform_2(%arg0: i32) -> (i32, i32) {
    %c0_i32 = arith.constant 0 : i32
    %c0_i32_0 = arith.constant 0 : i32
    %c0_i32_1 = arith.constant 0 : i32
    return %c0_i32, %c0_i32_0 : i32, i32
  }
  func.func @transform_3(%arg0: i32) -> (i32, i32) {
    %c0_i32 = arith.constant 0 : i32
    %c0_i32_0 = arith.constant 0 : i32
    %c0_i32_1 = arith.constant 0 : i32
    return %c0_i32, %c0_i32_0 : i32, i32
  }
  func.func @transform_4(%arg0: i32) -> (i32, i32) {
    %c0_i32 = arith.constant 0 : i32
    %c0_i32_0 = arith.constant 0 : i32
    %c0_i32_1 = arith.constant 0 : i32
    return %c0_i32, %c0_i32_0 : i32, i32
  }
  func.func @transform_5(%arg0: i32) -> (i32, i32) {
    %c0_i32 = arith.constant 0 : i32
    %c0_i32_0 = arith.constant 0 : i32
    return %arg0, %c0_i32 : i32, i32
  }
}

</mosaic_0001>

<bundles_post_ra>
// kernel: tpu_custom_call.1
= control target key start
LH: loop header
LB: loop body
LE: loop exit
PB: predicated region body
PF: predicated region fallthrough
CT: control target
= control target key end

     0   :  { %vm64_vm0 = vcmask 105472   ;;  %v527_v3 = vmov 0   ;;  %v528_v35 = vmov 0.0|0.0   ;;  %vm529_vm2 = vmmov 0   ;;  %s745_s0 = inlined_call_operand.vmem [shape: f32[128,13], index: 0, kind: input, shape index: {}]   ;;  %s746_s1 = inlined_call_operand.vmem [shape: f32[32,13], index: 1, kind: input, shape index: {}]   ;;  %s747_s2 = inlined_call_operand.vmem [shape: f32[32,1], index: 2, kind: input, shape index: {}]   ;;  %s748_s4 = inlined_call_operand.vmem [shape: f32[3,1], index: 4, kind: input, shape index: {}]   ;;  %s749_s3 = inlined_call_operand.vmem [shape: f32[3,32], index: 3, kind: input, shape index: {}]   ;;  %s750_s5 = inlined_call_operand.vmem [shape: f32[128,3], index: 5, kind: output, shape index: {}]  }
   0x1   :  { %v20_v0 = vld [vmem:[%s745_s0] sm:$0xff]  ;;  %v21_v1 = vld [vmem:[%s745_s0 + $0x8] sm:$0xff]  ;;  %vm569_vm1 = vmpackc.low %vm64_vm0, %vm64_vm0  ;;  %521 = vset.pattern.permute.xlu0 %v527_v3  ;;  %522 = vset.pattern.permute.xlu1 %v527_v3  ;;  %v530_v36 = vmov 0.0   ;;  %vm221_vm3 = vcmask 261120   ;;  %vm295_vm4 = vcmask 1042432   ;;  %vm347_vm5 = vcmask 23552  }
   0x2   :  { %v463_v4 = vpack.c.bf16 %v21_v1, %v20_v0  ;;  %v22_v5 = vld [vmem:[%s745_s0 + $0x10] sm:$0xff]  ;;  %v23_v6 = vld [vmem:[%s745_s0 + $0x18] sm:$0xff]  ;;  %v36_v8 = vld [vmem:[%s746_s1] sm:$0xff]  ;;  %511 = vmatprep.subr.bf16.mxu1 %v528_v35  ;;  %460 = vmatprep.mubr.msk.f32.mxu1 %vm529_vm2, %v530_v36 }
   0x3   :  { %v469_v7 = vpack.c.bf16 %v23_v6, %v22_v5  ;;  %v24_v9 = vld [vmem:[%s745_s0 + $0x20] sm:$0xff]  ;;  %v25_v10 = vld [vmem:[%s745_s0 + $0x28] sm:$0xff]  ;;  %446 = vmatprep.mubr.msk.f32.mxu0 %vm64_vm0, %v36_v8  ;;  %v42_v12 = vld [vmem:[%s747_s2 + $0x10] sm:$0xff] }
   0x4   :  { %465 = vmatprep.subr.msk.bf16.mxu0 %vm569_vm1, %v463_v4  ;;  %v40_v11 = vld [vmem:[%s747_s2] sm:$0xff]  ;;  %56 = vperm.xlu1 %522, %v42_v12   ;;  %v475_v13 = vpack.c.bf16 %v25_v10, %v24_v9  ;;  %v41_v14 = vld [vmem:[%s747_s2 + $0x8] sm:$0xff]  ;;  %v43_v15 = vld [vmem:[%s747_s2 + $0x18] sm:$0xff] }
   0x5   :  { %468 = vmatpush3.bf16.xpose.msk.msra.mxu0 %vm569_vm1, %v463_v4  ;;  %46 = vperm.xlu0 %521, %v40_v11   ;;  %v215_v16 = vld [vmem:[%s748_s4] sm:$0x7]  ;;  %v26_v17 = vld [vmem:[%s745_s0 + $0x30] sm:$0xff]  ;;  %v27_v18 = vld [vmem:[%s745_s0 + $0x38] sm:$0xff] }
   0x6   :  { %471 = vmatprep.subr.msk.bf16.mxu0 %vm569_vm1, %v469_v7  ;;  %v481_v19 = vpack.c.bf16 %v27_v18, %v26_v17  ;;  %v28_v20 = vld [vmem:[%s745_s0 + $0x40] sm:$0xff]  ;;  %v29_v21 = vld [vmem:[%s745_s0 + $0x48] sm:$0xff]  ;;  %v30_v23 = vld [vmem:[%s745_s0 + $0x50] sm:$0xff] }
   0x7   :  { %v487_v22 = vpack.c.bf16 %v29_v21, %v28_v20  ;;  %v31_v24 = vld [vmem:[%s745_s0 + $0x58] sm:$0xff]  ;;  %v32_v26 = vld [vmem:[%s745_s0 + $0x60] sm:$0xff]  ;;  %v33_v27 = vld [vmem:[%s745_s0 + $0x68] sm:$0xff] }
   0x8   :  { %61 = vperm.xlu1 %522, %v43_v15   ;;  %v493_v25 = vpack.c.bf16 %v31_v24, %v30_v23  ;;  %v499_v28 = vpack.c.bf16 %v33_v27, %v32_v26  ;;  %v34_v29 = vld [vmem:[%s745_s0 + $0x70] sm:$0xff]  ;;  %v35_v30 = vld [vmem:[%s745_s0 + $0x78] sm:$0xff]  ;;  %v37_v32 = vld [vmem:[%s746_s1 + $0x8] sm:$0xff] }
   0x9   :  { %51 = vperm.xlu0 %521, %v41_v14   ;;  %v505_v31 = vpack.c.bf16 %v35_v30, %v34_v29  ;;  %v38_v33 = vld [vmem:[%s746_s1 + $0x10] sm:$0xff]  ;;  %v39_v34 = vld [vmem:[%s746_s1 + $0x18] sm:$0xff]  ;;  %v214_v55 = vld [vmem:[%s749_s3] sm:$0x7] }
   0xd   :  { %474 = vmatpush3.bf16.xpose.msk.msra.mxu0 %vm569_vm1, %v469_v7  ;;  %218 = vperm.xlu0 %521, %v215_v16  }
   0xe   :  { %477 = vmatprep.subr.msk.bf16.mxu0 %vm569_vm1, %v475_v13 }
  0x15   :  { %480 = vmatpush3.bf16.xpose.msk.msra.mxu0 %vm569_vm1, %v475_v13 }
  0x16   :  { %483 = vmatprep.subr.msk.bf16.mxu0 %vm569_vm1, %v481_v19 }
  0x1d   :  { %486 = vmatpush3.bf16.xpose.msk.msra.mxu0 %vm569_vm1, %v481_v19 }
  0x1e   :  { %489 = vmatprep.subr.msk.bf16.mxu0 %vm569_vm1, %v487_v22 }
  0x25   :  { %492 = vmatpush3.bf16.xpose.msk.msra.mxu0 %vm569_vm1, %v487_v22 }
  0x26   :  { %495 = vmatprep.subr.msk.bf16.mxu0 %vm569_vm1, %v493_v25 }
  0x2d   :  { %498 = vmatpush3.bf16.xpose.msk.msra.mxu0 %vm569_vm1, %v493_v25 }
  0x2e   :  { %501 = vmatprep.subr.msk.bf16.mxu0 %vm569_vm1, %v499_v28 }
  0x35   :  { %504 = vmatpush3.bf16.xpose.msk.msra.mxu0 %vm569_vm1, %v499_v28 }
  0x36   :  { %507 = vmatprep.subr.msk.bf16.mxu0 %vm569_vm1, %v505_v31 }
  0x3d   :  { %510 = vmatpush3.bf16.xpose.msk.msra.mxu0 %vm569_vm1, %v505_v31 }
  0x44   :  { %447 = vmatmul.mubr.msk.f32.vlgmr.msra.gmra.mrb[0].mxu0 %vm64_vm0, %v37_v32 }
  0x45   :  { %449 = vmatprep.mubr.msk.f32.mxu0 %vm64_vm0, %v38_v33 }
  0x48   :  { %450 = vmatmul.mubr.msk.f32.gmra.mrb[2].mxu0 %vm64_vm0, %v39_v34 }
  0x83   :  { %v57_v38 = vpop.permute.xlu1 %56 }
  0x84   :  { %v47_v37 = vpop.permute.xlu0 %46 }
  0x87   :  { %v62_v45 = vpop.permute.xlu1 %61 }
  0x88   :  { %v52_v39 = vpop.permute.xlu0 %51 }
  0x8c   :  { %v219_v56 = vpop.permute.xlu0 %218 }
 0x117   :  { %v448_v40 = vpop.f32.mrb[0].mxu0 }
 0x118   :  { %v197_v41 = vadd.f32 %v448_v40, %v52_v39  ;;  %v191_v42 = vpop.f32.mrb[1].mxu0 }
 0x119   :  { %v192_v43 = vadd.f32 %v191_v42, %v47_v37 }
 0x11a   :  { %v211_v44 = vmax.f32 %v197_v41, 0.0 }
 0x11b   :  { %v210_v46 = vmax.f32 %v192_v43, 0.0  ;;  %v451_v47 = vpop.f32.mrb[2].mxu0 }
 0x11c   :  { %v207_v48 = vadd.f32 %v451_v47, %v62_v45  ;;  %v201_v49 = vpop.f32.mrb[3].mxu0 }
 0x11d   :  { %v202_v50 = vadd.f32 %v201_v49, %v57_v38  ;;  %v512_v51 = vpack.c.bf16 %v211_v44, %v210_v46 }
 0x11e   :  { %v213_v52 = vmax.f32 %v207_v48, 0.0 }
 0x11f   :  { %v212_v53 = vmax.f32 %v202_v50, 0.0  ;;  %513 = vmatpush3.bf16.msra.mxu1 %v512_v51 }
 0x120   :  { %514 = vmatprep.subr.bf16.mxu1 %v528_v35 }
 0x121   :  { %v515_v54 = vpack.c.bf16 %v213_v52, %v212_v53 }
 0x123   :  { %516 = vmatpush3.bf16.msra.mxu1 %v515_v54 }
 0x126   :  { %461 = vmatmul.mubr.msk.f32.vlgmr.msra.gmra.mrb[0].mxu1 %vm221_vm3, %v214_v55 }
 0x1f9   :  { %v291_v57 = vpop.f32.mrb[0].mxu1 }
 0x1fa   :  { %v292_v58 = vadd.f32 %v291_v57, %v219_v56  ;;  %v462_v59 = vpop.f32.mrb[1].mxu1 }
 0x1fc   :  { %v296_v60 = vsel %vm295_vm4, %v292_v58, -inf }
 0x1fd   :  { %v297_v61 = vrot.slane %v296_v60, 4 }
 0x1ff   :  { %v298_v62 = vmax.f32 %v296_v60, %v297_v61 }
 0x201   :  { %v299_v63 = vrot.slane %v298_v62, 2 }
 0x203   :  { %v300_v0 = vmax.f32 %v298_v62, %v299_v63 }
 0x205   :  { %v301_v1 = vrot.slane %v300_v0, 1 }
 0x207   :  { %v302_v2 = vmax.f32 %v300_v0, %v301_v1 }
 0x209   :  { %v303_v3 = vsub.f32 %v292_v58, %v302_v2 }
 0x20b   :  { %v304_v4 = vmul.f32 1.442695, %v303_v3 }
 0x20d   :  { %523 = vpow2.f32 %v304_v4 }
 0x217   :  { %v524_v5 = vpop.eup %523 }
 0x218   :  { %v306_v6 = vsel %vm295_vm4, %v524_v5, 0.0 }
 0x219   :  { %v307_v7 = vrot.slane %v306_v6, 4 }
 0x21b   :  { %v308_v8 = vadd.f32 %v307_v7, %v306_v6 }
 0x21d   :  { %v309_v9 = vrot.slane %v308_v8, 2 }
 0x21f   :  { %v310_v10 = vadd.f32 %v309_v9, %v308_v8 }
 0x221   :  { %v311_v11 = vrot.slane %v310_v10, 1 }
 0x223   :  { %v312_v12 = vadd.f32 %v311_v11, %v310_v10 }
 0x225   :  { %525 = vrcp.f32 %v312_v12 }
 0x22f   :  { %v526_v13 = vpop.eup %525 }
 0x230   :  { %v314_v14 = vmul.f32 %v526_v13, %v524_v5 }
 0x232   :  { %315 = vxpose.xlu1.b32.start.end [1/1] (short) %v314_v14, 128 }
 0x2b2   :  { %v331_v15 = vpop.trf.xlu1 }
 0x2b3   :  { %348 = vst.msk [vmem:[%s750_s5] sm:$0xff] %vm347_vm5, %v331_v15 }
 0x2b6   :  { %v332_v16 = vpop.trf.xlu1 }
 0x2b7   :  { %349 = vst.msk [vmem:[%s750_s5 + $0x8] sm:$0xff] %vm347_vm5, %v332_v16 }
 0x2ba   :  { %v333_v17 = vpop.trf.xlu1 }
 0x2bb   :  { %350 = vst.msk [vmem:[%s750_s5 + $0x10] sm:$0xff] %vm347_vm5, %v333_v17 }
 0x2be   :  { %v334_v18 = vpop.trf.xlu1 }
 0x2bf   :  { %351 = vst.msk [vmem:[%s750_s5 + $0x18] sm:$0xff] %vm347_vm5, %v334_v18 }
 0x2c2   :  { %v335_v19 = vpop.trf.xlu1 }
 0x2c3   :  { %352 = vst.msk [vmem:[%s750_s5 + $0x20] sm:$0xff] %vm347_vm5, %v335_v19 }
 0x2c6   :  { %v336_v20 = vpop.trf.xlu1 }
 0x2c7   :  { %353 = vst.msk [vmem:[%s750_s5 + $0x28] sm:$0xff] %vm347_vm5, %v336_v20 }
 0x2ca   :  { %v337_v21 = vpop.trf.xlu1 }
 0x2cb   :  { %354 = vst.msk [vmem:[%s750_s5 + $0x30] sm:$0xff] %vm347_vm5, %v337_v21 }
 0x2ce   :  { %v338_v22 = vpop.trf.xlu1 }
 0x2cf   :  { %355 = vst.msk [vmem:[%s750_s5 + $0x38] sm:$0xff] %vm347_vm5, %v338_v22 }
 0x2d2   :  { %v339_v23 = vpop.trf.xlu1 }
 0x2d3   :  { %356 = vst.msk [vmem:[%s750_s5 + $0x40] sm:$0xff] %vm347_vm5, %v339_v23 }
 0x2d6   :  { %v340_v24 = vpop.trf.xlu1 }
 0x2d7   :  { %357 = vst.msk [vmem:[%s750_s5 + $0x48] sm:$0xff] %vm347_vm5, %v340_v24 }
 0x2da   :  { %v341_v25 = vpop.trf.xlu1 }
 0x2db   :  { %358 = vst.msk [vmem:[%s750_s5 + $0x50] sm:$0xff] %vm347_vm5, %v341_v25 }
 0x2de   :  { %v342_v26 = vpop.trf.xlu1 }
 0x2df   :  { %359 = vst.msk [vmem:[%s750_s5 + $0x58] sm:$0xff] %vm347_vm5, %v342_v26 }
 0x2e2   :  { %v343_v27 = vpop.trf.xlu1 }
 0x2e3   :  { %360 = vst.msk [vmem:[%s750_s5 + $0x60] sm:$0xff] %vm347_vm5, %v343_v27 }
 0x2e6   :  { %v344_v28 = vpop.trf.xlu1 }
 0x2e7   :  { %361 = vst.msk [vmem:[%s750_s5 + $0x68] sm:$0xff] %vm347_vm5, %v344_v28 }
 0x2ea   :  { %v345_v29 = vpop.trf.xlu1 }
 0x2eb   :  { %362 = vst.msk [vmem:[%s750_s5 + $0x70] sm:$0xff] %vm347_vm5, %v345_v29 }
 0x2ee   :  { %v346_v30 = vpop.trf.xlu1 }
 0x2ef   :  { %363 = vst.msk [vmem:[%s750_s5 + $0x78] sm:$0xff] %vm347_vm5, %v346_v30 }

</bundles_post_ra>
